<compile_context>
chip_gen: v6e
topology: v6e:2x2x1
jax: 0.10.0
libtpu: 0.0.40
codegen_flags: <defaults>
</compile_context>

<pallas_src>
import functools
import itertools

import numpy as np

import jax
import jax.numpy as jnp
from jax import lax
from jax.experimental import pallas as pl
from jax.experimental.pallas import tpu as pltpu

KS = 3            # kernel size of every block in SparseCostRegNet
K = KS ** 3       # 27


def _round_up(x, m):
    return -(-x // m) * m


def _kernel_offsets(ks=KS, dilation=1):
    r = range(-(ks // 2), ks // 2 + 1)
    return np.array(list(itertools.product(r, r, r)), dtype=np.int64) * dilation


# --------------------------------------------------------------------------- #
# Host-side coordinate manager (numpy): kernel maps + stride-2 downsampling.
# --------------------------------------------------------------------------- #
def build_kernel_map(in_coords, out_coords, *, offset_stride=1, ks=KS, dilation=1):
    """Neighbour table (N_out, K): nbr[i, k] = j such that
    in_coords[j] == out_coords[i] + offset_k * offset_stride  (spatial dims),
    or N_in if that input voxel does not exist (-> zero feature row)."""
    in_c = np.asarray(in_coords, np.int64)
    out_c = np.asarray(out_coords, np.int64)
    n_in = in_c.shape[0]
    offs = _kernel_offsets(ks, dilation) * int(offset_stride)          # (K, 3)
    reach = int(np.abs(offs).max()) if offs.size else 0
    both = np.concatenate([in_c, out_c], axis=0)
    mins = both.min(axis=0) - reach
    spans = both.max(axis=0) + reach - mins + 1

    def encode(c):
        key = np.zeros(c.shape[0], dtype=np.int64)
        for d in range(4):
            key = key * spans[d] + (c[:, d] - mins[d])
        return key

    keys = encode(in_c)
    order = np.argsort(keys, kind="stable").astype(np.int32)
    skeys = keys[order]

    nbr = np.full((out_c.shape[0], offs.shape[0]), n_in, dtype=np.int32)
    for kk in range(offs.shape[0]):
        q = out_c.copy()
        q[:, 1:] += offs[kk]
        qk = encode(q)
        pos = np.searchsorted(skeys, qk)
        pos_c = np.minimum(pos, max(n_in - 1, 0))
        hit = (pos < n_in) & (skeys[pos_c] == qk)
        nbr[:, kk] = np.where(hit, order[pos_c], np.int32(n_in))
    return nbr


def downsample_coords(coords, *, stride=2, tensor_stride=1):
    """Output coordinates of a stride-2 sparse conv (torchsparse spdownsample)."""
    c = np.asarray(coords, np.int64).copy()
    step = stride * tensor_stride
    c[:, 1:] = (c[:, 1:] // step) * step
    return np.unique(c, axis=0).astype(np.int32)


def build_sparse_cost_reg_maps(coords0):
    """All coordinate sets / kernel maps the SparseCostRegNet forward needs."""
    coords0 = np.asarray(coords0, np.int32)
    coords1 = downsample_coords(coords0, tensor_stride=1)   # tensor stride 2
    coords2 = downsample_coords(coords1, tensor_stride=2)   # tensor stride 4
    coords3 = downsample_coords(coords2, tensor_stride=4)   # tensor stride 8
    return dict(
        nbr0=build_kernel_map(coords0, coords0, offset_stride=1),
        down01=build_kernel_map(coords0, coords1, offset_stride=1),
        nbr1=build_kernel_map(coords1, coords1, offset_stride=2),
        down12=build_kernel_map(coords1, coords2, offset_stride=2),
        nbr2=build_kernel_map(coords2, coords2, offset_stride=4),
        down23=build_kernel_map(coords2, coords3, offset_stride=4),
        nbr3=build_kernel_map(coords3, coords3, offset_stride=8),
        up32=build_kernel_map(coords3, coords2, offset_stride=4),
        up21=build_kernel_map(coords2, coords1, offset_stride=2),
        up10=build_kernel_map(coords1, coords0, offset_stride=1),
    )


# --------------------------------------------------------------------------- #
# Kernel 1: folded-K sparse conv + per-tile BN partial statistics.
# grid = (num_tiles,), "parallel".
# --------------------------------------------------------------------------- #
def _conv_stats_kernel(n_valid, tile_n, g_ref, w_ref, conv_ref, psum_ref, psq_ref):
    # (tile_n, K*Cin) bf16 @ (K*Cin, Cout) bf16 -> f32 on the MXU.
    conv = jnp.dot(g_ref[...], w_ref[...], preferred_element_type=jnp.float32)
    conv_ref[...] = conv
    # Mask zero-padded rows past n_valid out of the statistics.
    row = lax.broadcasted_iota(jnp.int32, conv.shape, 0) + pl.program_id(0) * tile_n
    cv = jnp.where(row < n_valid, conv, 0.0)
    psum_ref[...] = jnp.sum(cv, axis=0, keepdims=True)          # (1, Cout)
    psq_ref[...] = jnp.sum(cv * conv, axis=0, keepdims=True)    # (1, Cout)


# --------------------------------------------------------------------------- #
# Kernel 2: BatchNorm (precomputed scale/shift) + ReLU, optional fused skip-add.
# --------------------------------------------------------------------------- #
def _bn_relu_kernel(conv_ref, scale_ref, shift_ref, o_ref):
    y = conv_ref[...] * scale_ref[...] + shift_ref[...]
    o_ref[...] = jnp.maximum(y, 0.0).astype(o_ref.dtype)


def _bn_relu_add_kernel(conv_ref, scale_ref, shift_ref, skip_ref, o_ref):
    y = jnp.maximum(conv_ref[...] * scale_ref[...] + shift_ref[...], 0.0)
    o_ref[...] = (y + skip_ref[...]).astype(o_ref.dtype)


def sparse_conv_bn_relu(feats, nbr_idx, weight, gamma, beta, skip=None, *,
                        eps=1e-5, compute_dtype=jnp.bfloat16, tile_n_max=256):
    """One BasicSparse{Conv,Deconv}olutionBlock: sparse conv + BN + ReLU (+skip)."""
    n_in, cin = feats.shape
    n_out, k = nbr_idx.shape
    k2, cin2, cout = weight.shape
    assert k2 == k and cin2 == cin
    kc = k * cin

    # Gather neighbour rows in the compute dtype and fold K into the matmul
    # contraction: (N_out, K*Cin).  Missing neighbours hit the trailing zero row.
    feats_q = feats.astype(compute_dtype)
    feats_ext = jnp.concatenate([feats_q, jnp.zeros((1, cin), compute_dtype)], 0)
    gathered = feats_ext[jnp.asarray(nbr_idx)].reshape(n_out, kc)
    w_flat = weight.reshape(kc, cout).astype(compute_dtype)

    tile_n = min(int(tile_n_max), _round_up(n_out, 128))        # >=128, mult of 128
    n_pad = _round_up(n_out, tile_n)
    num_tiles = n_pad // tile_n
    gathered = jnp.pad(gathered, ((0, n_pad - n_out), (0, 0)))

    conv, psum, psq = pl.pallas_call(
        functools.partial(_conv_stats_kernel, n_out, tile_n),
        out_shape=(
            jax.ShapeDtypeStruct((n_pad, cout), jnp.float32),
            jax.ShapeDtypeStruct((num_tiles, 1, cout), jnp.float32),
            jax.ShapeDtypeStruct((num_tiles, 1, cout), jnp.float32),
        ),
        grid_spec=pltpu.PrefetchScalarGridSpec(
            num_scalar_prefetch=0,
            grid=(num_tiles,),
            in_specs=[
                pl.BlockSpec((tile_n, kc), lambda i: (i, 0)),
                pl.BlockSpec((kc, cout), lambda i: (0, 0)),
            ],
            out_specs=[
                pl.BlockSpec((tile_n, cout), lambda i: (i, 0)),
                pl.BlockSpec((None, 1, cout), lambda i: (i, 0, 0)),
                pl.BlockSpec((None, 1, cout), lambda i: (i, 0, 0)),
            ],
        ),
        compiler_params=pltpu.CompilerParams(
            dimension_semantics=("parallel",)),
    )(gathered, w_flat)

    # Fold per-tile partial stats -> training-mode BatchNorm scale / shift.
    mean = jnp.sum(psum, axis=0) / n_out                          # (1, Cout)
    var = jnp.maximum(jnp.sum(psq, axis=0) / n_out - mean * mean, 0.0)
    scale = (gamma * lax.rsqrt(var + eps)).astype(jnp.float32)
    shift = (beta - mean * scale).astype(jnp.float32)

    if skip is None:
        kernel = _bn_relu_kernel
        extra_in, extra_specs = (), ()
    else:
        skip_p = jnp.pad(skip.astype(jnp.float32), ((0, n_pad - n_out), (0, 0)))
        kernel = _bn_relu_add_kernel
        extra_in = (skip_p,)
        extra_specs = (pl.BlockSpec((tile_n, cout), lambda i: (i, 0)),)

    out = pl.pallas_call(
        kernel,
        out_shape=jax.ShapeDtypeStruct((n_pad, cout), jnp.float32),
        grid_spec=pltpu.PrefetchScalarGridSpec(
            num_scalar_prefetch=0,
            grid=(num_tiles,),
            in_specs=[
                pl.BlockSpec((tile_n, cout), lambda i: (i, 0)),
                pl.BlockSpec((1, cout), lambda i: (0, 0)),
                pl.BlockSpec((1, cout), lambda i: (0, 0)),
                *extra_specs,
            ],
            out_specs=pl.BlockSpec((tile_n, cout), lambda i: (i, 0)),
        ),
        compiler_params=pltpu.CompilerParams(
            dimension_semantics=("parallel",)),
    )(conv, scale, shift, *extra_in)

    return out[:n_out]                                            # (N_out, Cout)


# --------------------------------------------------------------------------- #
# Pure-JAX reference block (same bf16 input/weight quantization, no Pallas).
# --------------------------------------------------------------------------- #
def reference_block(feats, nbr_idx, weight, gamma, beta, skip=None, *,
                    eps=1e-5, compute_dtype=jnp.bfloat16):
    n_out, k = nbr_idx.shape
    cin = feats.shape[1]
    f = feats.astype(compute_dtype).astype(jnp.float32)
    w = weight.astype(compute_dtype).astype(jnp.float32)
    fe = jnp.concatenate([f, jnp.zeros((1, cin), jnp.float32)], 0)
    g = fe[jnp.asarray(nbr_idx)].reshape(n_out, k * cin)
    conv = g @ w.reshape(k * cin, -1)
    mean = conv.mean(axis=0, keepdims=True)
    var = conv.var(axis=0, keepdims=True)
    y = jnp.maximum(gamma * (conv - mean) * lax.rsqrt(var + eps) + beta, 0.0)
    if skip is not None:
        y = y + skip
    return y


# --------------------------------------------------------------------------- #
# SparseCostRegNet forward: encoder (stride-2 convs) + decoder (stride-2
# transposed convs) with skip additions.  Returns x.F (features at coords0).
# --------------------------------------------------------------------------- #
def sparse_cost_reg_net(feats, maps, params, block_fn):
    p = params
    conv0 = block_fn(feats, maps["nbr0"], **p["conv0"])           # (N0, d_out)
    x = block_fn(conv0, maps["down01"], **p["conv1"])             # (N1, 16)
    conv2 = block_fn(x, maps["nbr1"], **p["conv2"])               # (N1, 16)
    x = block_fn(conv2, maps["down12"], **p["conv3"])             # (N2, 32)
    conv4 = block_fn(x, maps["nbr2"], **p["conv4"])               # (N2, 32)
    x = block_fn(conv4, maps["down23"], **p["conv5"])             # (N3, 64)
    x = block_fn(x, maps["nbr3"], **p["conv6"])                   # (N3, 64)
    x = block_fn(x, maps["up32"], **p["conv7"], skip=conv4)       # (N2, 32)
    x = block_fn(x, maps["up21"], **p["conv9"], skip=conv2)       # (N1, 16)
    x = block_fn(x, maps["up10"], **p["conv11"], skip=conv0)      # (N0, d_out)
    return x


def init_params(key, d_in, d_out=8):
    layer_channels = {
        "conv0": (d_in, d_out), "conv1": (d_out, 16), "conv2": (16, 16),
        "conv3": (16, 32), "conv4": (32, 32), "conv5": (32, 64),
        "conv6": (64, 64), "conv7": (64, 32), "conv9": (32, 16),
        "conv11": (16, d_out),
    }
    params = {}
    keys = jax.random.split(key, len(layer_channels))
    for (name, (cin, cout)), kk in zip(layer_channels.items(), keys):
        kw, kg, kb = jax.random.split(kk, 3)
        std = (2.0 / (K * cin)) ** 0.5
        params[name] = dict(
            weight=std * jax.random.normal(kw, (K, cin, cout), jnp.float32),
            gamma=1.0 + 0.1 * jax.random.normal(kg, (1, cout), jnp.float32),
            beta=0.1 * jax.random.normal(kb, (1, cout), jnp.float32),
        )
    return params


if __name__ == "__main__":
    key = jax.random.PRNGKey(0)
    k_feat, k_param, k_c0, k_c1 = jax.random.split(key, 4)

    d_in, d_out = 8, 8
    batch, grid_dim, pts_per_batch = 2, 16, 200
    n0 = batch * pts_per_batch                                   # 400 active voxels

    # deterministic, unique voxel coordinates per batch element
    coords_list = []
    for b, kc in enumerate((k_c0, k_c1)):
        flat = jax.random.permutation(kc, grid_dim ** 3)[:pts_per_batch]
        xc = flat // (grid_dim * grid_dim)
        yc = (flat // grid_dim) % grid_dim
        zc = flat % grid_dim
        coords_list.append(jnp.stack([jnp.full_like(xc, b), xc, yc, zc], axis=1))
    coords0 = np.asarray(jnp.concatenate(coords_list, axis=0), dtype=np.int32)

    feats = jax.random.normal(k_feat, (n0, d_in), jnp.float32)
    params = init_params(k_param, d_in, d_out)
    maps = build_sparse_cost_reg_maps(coords0)                   # host-side kernel maps

    block = functools.partial(sparse_conv_bn_relu, tile_n_max=256)
    out = sparse_cost_reg_net(feats, maps, params, block)
    out = jax.block_until_ready(out)

    ref = sparse_cost_reg_net(feats, maps, params, reference_block)

    assert out.shape == (n0, d_out)
    assert bool(jnp.all(jnp.isfinite(out)))
    err = jnp.abs(out - ref)
    # 10 cascaded bf16 blocks with batch-stat BN -> allow a few bf16 ulps of drift.
    assert bool(jnp.allclose(out, ref, atol=5e-2, rtol=5e-2)), float(err.max())
    assert float(jnp.mean(err)) < 1e-2, float(jnp.mean(err))

    print("KERNEL_OK")
</pallas_src>

<mosaic_0001>
module attributes {stable_mosaic.version = 11 : i64} {
  func.func @_conv_stats_kernel(%arg0: i32, %arg1: memref<256x216xbf16, #tpu.memory_space<vmem>>, %arg2: memref<216x8xbf16, #tpu.memory_space<vmem>>, %arg3: memref<256x8xf32, #tpu.memory_space<vmem>>, %arg4: memref<1x1x8xf32, #tpu.memory_space<vmem>>, %arg5: memref<1x1x8xf32, #tpu.memory_space<vmem>>) attributes {dimension_semantics = [#tpu.dimension_semantics<parallel>], iteration_bounds = array<i64: 2>, scalar_prefetch = 0 : i64, scratch_operands = 0 : i64, tpu.core_type = #tpu.core_type<tc>, window_params = [{transform_indices = @transform_0, window_bounds = array<i64: 256, 216>}, {pipeline_mode = #tpu.pipeline_mode<synchronous>, transform_indices = @transform_1, window_bounds = array<i64: 216, 8>}, {transform_indices = @transform_2, window_bounds = array<i64: 256, 8>}, {transform_indices = @transform_3, window_bounds = array<i64: 1, 1, 8>}, {transform_indices = @transform_4, window_bounds = array<i64: 1, 1, 8>}]} {
    %c0 = arith.constant 0 : index
    %c0_0 = arith.constant 0 : index
    %0 = vector.load %arg1[%c0, %c0_0] : memref<256x216xbf16, #tpu.memory_space<vmem>>, vector<256x216xbf16>
    %c0_1 = arith.constant 0 : index
    %c0_2 = arith.constant 0 : index
    %1 = vector.load %arg2[%c0_1, %c0_2] : memref<216x8xbf16, #tpu.memory_space<vmem>>, vector<216x8xbf16>
    %cst = arith.constant dense<0.000000e+00> : vector<256x8xf32>
    %2 = tpu.matmul %0, %1, %cst {dimension_numbers = #tpu.dot_dimension_numbers<[1], [0], [0], [1], [0, 0, 1, 1], [], []>} : vector<256x216xbf16>, vector<216x8xbf16>, vector<256x8xf32> -> vector<256x8xf32>
    %c0_3 = arith.constant 0 : index
    %c0_4 = arith.constant 0 : index
    %3 = vector.load %arg3[%c0_3, %c0_4] : memref<256x8xf32, #tpu.memory_space<vmem>>, vector<256x8xf32>
    tpu.vector_store %arg3[%c0_3, %c0_4], %2 {strides = array<i32>} : memref<256x8xf32, #tpu.memory_space<vmem>>, vector<256x8xf32>,
    %4 = tpu.iota {dimensions = array<i32: 0>} : vector<256x8xi32>
    %c256_i32 = arith.constant 256 : i32
    %5 = arith.muli %arg0, %c256_i32 : i32
    %6 = vector.broadcast %5 : i32 to vector<256x8xi32>
    %7 = arith.addi %4, %6 : vector<256x8xi32>
    %c400_i32 = arith.constant 400 : i32
    %8 = vector.broadcast %c400_i32 : i32 to vector<256x8xi32>
    %9 = arith.cmpi slt, %7, %8 : vector<256x8xi32>
    %cst_5 = arith.constant 0.000000e+00 : f32
    %10 = vector.broadcast %cst_5 : f32 to vector<256x8xf32>
    %11 = arith.select %9, %2, %10 : vector<256x8xi1>, vector<256x8xf32>
    %cst_6 = arith.constant dense<0.000000e+00> : vector<8xf32>
    %12 = vector.multi_reduction <add>, %11, %cst_6 [0] : vector<256x8xf32> to vector<8xf32>
    %13 = vector.shape_cast %12 : vector<8xf32> to vector<1x8xf32>
    %c0_7 = arith.constant 0 : index
    %c0_8 = arith.constant 0 : index
    %c0_9 = arith.constant 0 : index
    %14 = vector.load %arg4[%c0_7, %c0_8, %c0_9] : memref<1x1x8xf32, #tpu.memory_space<vmem>>, vector<1x1x8xf32>
    %15 = vector.shape_cast %14 : vector<1x1x8xf32> to vector<1x8xf32>
    %16 = vector.shape_cast %13 : vector<1x8xf32> to vector<1x1x8xf32>
    tpu.vector_store %arg4[%c0_7, %c0_8, %c0_9], %16 {strides = array<i32>} : memref<1x1x8xf32, #tpu.memory_space<vmem>>, vector<1x1x8xf32>,
    %17 = arith.mulf %11, %2 : vector<256x8xf32>
    %cst_10 = arith.constant dense<0.000000e+00> : vector<8xf32>
    %18 = vector.multi_reduction <add>, %17, %cst_10 [0] : vector<256x8xf32> to vector<8xf32>
    %19 = vector.shape_cast %18 : vector<8xf32> to vector<1x8xf32>
    %c0_11 = arith.constant 0 : index
    %c0_12 = arith.constant 0 : index
    %c0_13 = arith.constant 0 : index
    %20 = vector.load %arg5[%c0_11, %c0_12, %c0_13] : memref<1x1x8xf32, #tpu.memory_space<vmem>>, vector<1x1x8xf32>
    %21 = vector.shape_cast %20 : vector<1x1x8xf32> to vector<1x8xf32>
    %22 = vector.shape_cast %19 : vector<1x8xf32> to vector<1x1x8xf32>
    tpu.vector_store %arg5[%c0_11, %c0_12, %c0_13], %22 {strides = array<i32>} : memref<1x1x8xf32, #tpu.memory_space<vmem>>, vector<1x1x8xf32>,
    return
  }
  func.func @transform_0(%arg0: i32) -> (i32, i32) {
    %c0_i32 = arith.constant 0 : i32
    %c0_i32_0 = arith.constant 0 : i32
    return %arg0, %c0_i32 : i32, i32
  }
  func.func @transform_1(%arg0: i32) -> (i32, i32) {
    %c0_i32 = arith.constant 0 : i32
    %c0_i32_0 = arith.constant 0 : i32
    %c0_i32_1 = arith.constant 0 : i32
    return %c0_i32, %c0_i32_0 : i32, i32
  }
  func.func @transform_2(%arg0: i32) -> (i32, i32) {
    %c0_i32 = arith.constant 0 : i32
    %c0_i32_0 = arith.constant 0 : i32
    return %arg0, %c0_i32 : i32, i32
  }
  func.func @transform_3(%arg0: i32) -> (i32, i32, i32) {
    %c0_i32 = arith.constant 0 : i32
    %c0_i32_0 = arith.constant 0 : i32
    %c0_i32_1 = arith.constant 0 : i32
    return %arg0, %c0_i32, %c0_i32_0 : i32, i32, i32
  }
  func.func @transform_4(%arg0: i32) -> (i32, i32, i32) {
    %c0_i32 = arith.constant 0 : i32
    %c0_i32_0 = arith.constant 0 : i32
    %c0_i32_1 = arith.constant 0 : i32
    return %arg0, %c0_i32, %c0_i32_0 : i32, i32, i32
  }
}

</mosaic_0001>

<bundles_post_ra>
// kernel: tpu_custom_call.1
= control target key start
LH: loop header
LB: loop body
LE: loop exit
PB: predicated region body
PF: predicated region fallthrough
CT: control target
= control target key end

     0   :  { %10 = vsyncpa [#allocation3], 0  ;;  %s2205_s0 = inlined_call_operand.vmem [shape: bf16[512,216], index: 0, kind: input, shape index: {}]   ;;  %s2206_s1 = inlined_call_operand.vmem [shape: bf16[216,8], index: 1, kind: input, shape index: {}]   ;;  %s2207_s2 = inlined_call_operand.vmem [shape: f32[512,8], index: 2, kind: output, shape index: {0}]   ;;  %s2208_s3 = inlined_call_operand.hbm [shape: f32[2,1,8], index: 3, kind: output, shape index: {1}]   ;;  %s2209_s4 = inlined_call_operand.hbm [shape: f32[2,1,8], index: 4, kind: output, shape index: {2}]  }
   0x1   :  { %12 = vsyncpa [#allocation3 + $0x1], 0 }
   0x2   :  { %13 = vsyncpa [#allocation5], 0 }
   0x3   :  { %15 = vsyncpa [#allocation5 + $0x1], 0  ;;  %s1538_s15 = smov 0   ;;  %s1540_s16 = smov 0  }
   0x4   :  { %s1542_s17 = smov 0   ;;  %s1544_s18 = smov 0  }
   0x5 LB: > { %s1559_s19 = sadd.s32 4294967295, %s1508_s18   ;;  %s1206_s20 = sadd.s32 4294967294, %s1508_s18   ;;  %s1508_s18 = sphi %s1544_s18, %s2215_s18   ;;  %s1504_s17 = sphi %s1542_s17, %s2214_s17   ;;  %s1500_s16 = sphi %s1540_s16, %s2213_s16   ;;  %s1496_s15 = sphi %s1538_s15, %s2212_s15  }
   0x6   : > { %s1563_s21 = sadd.s32 1, %s1508_s18   ;;  %s101_s22 = sadd.s32 1, %s1504_s17 }
   0x7   : > { %s98_s23 = ssub.s32 %s1508_s18, %s1563_s21  ;;  %p111_p0 = scmp.ne.s32.totalorder %s1504_s17, %s1500_s16 }
   0x8   : > { %p99_p1 = scmp.eq.s32.totalorder %s98_s23, 0  ;;  %p112_p2 = scmp.eq.s32.totalorder %s1559_s19, 1 }
   0x9   : > { %p117_p3 = scmp.ne.s32.totalorder %s1500_s16, %s1496_s15  ;;  %p118_p4 = scmp.eq.s32.totalorder %s1206_s20, 1 }
   0xa   : > { %s1574_s24 = scalar_select %p99_p1, %s1504_s17, %s101_s22  }
   0xb   : > { %p1576_p5 = por %p112_p2, %p111_p0  ;;  %p1580_p6 = por %p118_p4, %p117_p3 }
   0xc   : > { %p1209_p7 = scmp.ge.s32.totalorder %s1508_s18, 1  ;;  %p175_p8 = scmp.lt.s32.totalorder %s1508_s18, 3 }
   0xe   : > { %p176_p9 = pnand %p1209_p7, %p175_p8 }
   0xf   : > { %s1210_s5 = sshll.u32 (!%p176_p9), %s1559_s19, 5  ;;  %s1511_s29 = smov (!%p176_p9), [#allocation2]  }
  0x10   : > { %179 = sbr.rel (%p176_p9) target bundleno = 414 (0x19e), region = 28  ;;  %p211_p10 = scmp.lt.s32.totalorder (!%p176_p9), %s1210_s5, 63 }
  0x11   : > { %s1422_s30 = sshll.u32 (!%p176_p9), %s1511_s29, 4  ;;  %s1423_s30 = int_to_ptr.vmem [resolvable:$false] %s1422_s30 }
  0x15   : > { %v1356_v0 = vld [vmem:[%s2206_s1 + $0x38] sm:$0xff]   ;;  %v1510_v1 = vmov 0   ;;  %v1357_v2 = vld [vmem:[%s2206_s1 + $0x30] sm:$0xff]   ;;  %s2217_s5 = smov (!%p211_p10, %s1210_s5), 63  ;;  %v1358_v3 = vld [vmem:[%s2206_s1 + $0x28] sm:$0xff]   ;;  %vm508_vm0 = vcmask 719872   ;;  %v755_v58 = vlaneseq }
  0x16   : > { %561 = vmatprep.subr.bf16.mxu0 %v1510_v1  ;;  %1283 = vmatprep.subr.bf16.mxu1 %v1510_v1  ;;  %s1282_s8 = sshll.u32 %s2217_s5, 3  ;;  %v1359_v4 = vld [vmem:[%s2206_s1 + $0x20] sm:$0xff]   ;;  %v1360_v5 = vld [vmem:[%s2206_s1 + $0x18] sm:$0xff]   ;;  %v1361_v7 = vld [vmem:[%s2206_s1 + $0x10] sm:$0xff]   ;;  %vm557_vm1 = vcmask 1043456   ;;  %vm722_vm2 = vcmask 64512  }
  0x17   : > { %562 = vmatpush1.bf16.msra.mxu0 %v1356_v0  ;;  %1297 = vmatpush1.bf16.msra.mxu1 %v1356_v0  ;;  %s1615_s13 = scalar_lea.vmem %s2205_s0, %s1282_s8  ;;  %v1362_v9 = vld [vmem:[%s2206_s1 + $0x8] sm:$0xff]   ;;  %v1363_v10 = vld [vmem:[%s2206_s1] sm:$0xff]   ;;  %v1366_v14 = vld [vmem:[%s2206_s1 + $0x58] sm:$0xff]   ;;  %s1720_s6 = scalar_lea.vmem %s2207_s2, %s1282_s8  ;;  %v1756_v63 = vshrl.u32 %v755_v58, 7 }
  0x18   : > { %563 = vmatprep.subr.bf16.mxu0 %v1510_v1  ;;  %1284 = vmatprep.subr.bf16.mxu1 %v1510_v1  ;;  %v1372_v6 = vld [vmem:[%s1615_s13 + $0x4] ss:$8 sps:$4 sm:$0xff]   ;;  %v1364_v11 = vld [vmem:[%s2206_s1 + $0x68] ss:$0 sps:$4 sm:$0xff]   ;;  %v1367_v15 = vld [vmem:[%s2206_s1 + $0x50] sm:$0xff]   ;;  %s1277_s5 = sshll.u32 %s1559_s19, 8 }
  0x19   : > { %1261 = vmatprep.mubr.msk.bf16.mxu0 %vm508_vm0, %v1372_v6  ;;  %v1384_v8 = vld [vmem:[%s1615_s13 + $0x84] ss:$8 sps:$4 sm:$0xff]   ;;  %v559_v12 = vsel %vm557_vm1, %v1364_v11, 0  ;;  %v1370_v18 = vld [vmem:[%s1615_s13] ss:$8 sps:$4 sm:$0xff]   ;;  %v758_v6 = vadd.s32 16, %v1756_v63 }
  0x1a   : > { %1269 = vmatprep.mubr.msk.bf16.mxu1 %vm508_vm0, %v1384_v8  ;;  %v1365_v13 = vld [vmem:[%s2206_s1 + $0x60] sm:$0xff]   ;;  %v1368_v16 = vld [vmem:[%s2206_s1 + $0x48] sm:$0xff]   ;;  %v1373_v20 = vld [vmem:[%s1615_s13 + $0x14] ss:$8 sps:$4 sm:$0xff]   ;;  %v760_v11 = vadd.s32 32, %v1756_v63  ;;  %s2121_s8 = sand.u32 1, %s1500_s16  }
  0x1b   : > { %564 = vmatpush1.bf16.msra.mxu0 %v1357_v2  ;;  %1298 = vmatpush1.bf16.msra.mxu1 %v1357_v2  ;;  %v1369_v17 = vld [vmem:[%s2206_s1 + $0x40] sm:$0xff]   ;;  %v1388_v21 = vld [vmem:[%s1615_s13 + $0x94] ss:$8 sps:$4 sm:$0xff]   ;;  %v1375_v22 = vld [vmem:[%s1615_s13 + $0x10] ss:$8 sps:$4 sm:$0xff]   ;;  %v757_v2 = vadd.s32 8, %v1756_v63 }
  0x1c   : > { %565 = vmatprep.subr.bf16.mxu0 %v1510_v1  ;;  %1285 = vmatprep.subr.bf16.mxu1 %v1510_v1  ;;  %v1382_v19 = vld [vmem:[%s1615_s13 + $0x80] ss:$8 sps:$4 sm:$0xff]   ;;  %v1390_v23 = vld [vmem:[%s1615_s13 + $0x90] ss:$8 sps:$4 sm:$0xff]   ;;  %v1376_v24 = vld [vmem:[%s1615_s13 + $0x24] ss:$8 sps:$4 sm:$0xff]  }
  0x1d   : > { %v1394_v25 = vld [vmem:[%s1615_s13 + $0xa4] ss:$8 sps:$4 sm:$0xff]   ;;  %v1378_v26 = vld [vmem:[%s1615_s13 + $0x20] ss:$8 sps:$4 sm:$0xff]   ;;  %v1379_v28 = vld [vmem:[%s1615_s13 + $0x34] ss:$8 sps:$4 sm:$0xff]  }
  0x1e   : > { %v1396_v27 = vld [vmem:[%s1615_s13 + $0xa0] ss:$8 sps:$4 sm:$0xff]   ;;  %v1400_v29 = vld [vmem:[%s1615_s13 + $0xb4] ss:$8 sps:$4 sm:$0xff]   ;;  %v1381_v30 = vld [vmem:[%s1615_s13 + $0x30] ss:$8 sps:$4 sm:$0xff]  }
  0x1f   : > { %566 = vmatpush1.bf16.msra.mxu0 %v1358_v3  ;;  %1299 = vmatpush1.bf16.msra.mxu1 %v1358_v3  ;;  %v1402_v31 = vld [vmem:[%s1615_s13 + $0xb0] ss:$8 sps:$4 sm:$0xff]   ;;  %v1385_v32 = vld [vmem:[%s1615_s13 + $0x44] ss:$8 sps:$4 sm:$0xff]   ;;  %v1387_v34 = vld [vmem:[%s1615_s13 + $0x40] ss:$8 sps:$4 sm:$0xff]  }
  0x20   : > { %567 = vmatprep.subr.bf16.mxu0 %v1510_v1  ;;  %1286 = vmatprep.subr.bf16.mxu1 %v1510_v1  ;;  %v1406_v33 = vld [vmem:[%s1615_s13 + $0xc4] ss:$8 sps:$4 sm:$0xff]   ;;  %v1408_v35 = vld [vmem:[%s1615_s13 + $0xc0] ss:$8 sps:$4 sm:$0xff]   ;;  %v1391_v36 = vld [vmem:[%s1615_s13 + $0x54] ss:$8 sps:$4 sm:$0xff]  }
  0x21   : > { %v1409_v37 = vld [vmem:[%s1615_s13 + $0xd4] ss:$8 sps:$4 sm:$0xff]   ;;  %v1393_v38 = vld [vmem:[%s1615_s13 + $0x50] ss:$8 sps:$4 sm:$0xff]   ;;  %v1397_v40 = vld [vmem:[%s1615_s13 + $0x64] ss:$8 sps:$4 sm:$0xff]  }
  0x22   : > { %v1411_v39 = vld [vmem:[%s1615_s13 + $0xd0] ss:$8 sps:$4 sm:$0xff]   ;;  %v1412_v41 = vld [vmem:[%s1615_s13 + $0xe4] ss:$8 sps:$4 sm:$0xff]   ;;  %v1399_v42 = vld [vmem:[%s1615_s13 + $0x60] ss:$8 sps:$4 sm:$0xff]  }
  0x23   : > { %568 = vmatpush1.bf16.msra.mxu0 %v1359_v4  ;;  %1300 = vmatpush1.bf16.msra.mxu1 %v1359_v4  ;;  %v1414_v43 = vld [vmem:[%s1615_s13 + $0xe0] ss:$8 sps:$4 sm:$0xff]   ;;  %v1403_v44 = vld [vmem:[%s1615_s13 + $0x74] ss:$8 sps:$4 sm:$0xff]   ;;  %v1405_v46 = vld [vmem:[%s1615_s13 + $0x70] ss:$8 sps:$4 sm:$0xff]  }
  0x24   : > { %569 = vmatprep.subr.bf16.mxu0 %v1510_v1  ;;  %1287 = vmatprep.subr.bf16.mxu1 %v1510_v1  ;;  %v1415_v45 = vld [vmem:[%s1615_s13 + $0xf4] ss:$8 sps:$4 sm:$0xff]   ;;  %v1417_v47 = vld [vmem:[%s1615_s13 + $0xf0] ss:$8 sps:$4 sm:$0xff]   ;;  %s1278_s13 = sshll.u32 %s1559_s19, 4  ;;  %s203_s7 = scalar_lea.vmem [#allocation2], %s2121_s8 }
  0x25   : > { %s1085_s9 = sshll.u32 %s203_s7, 4  ;;  %s209_s10 = scalar_lea.vmem [#allocation4], %s2121_s8  ;;  %s2133_s9 = int_to_ptr.vmem [resolvable:$true] %s1085_s9 }
  0x26   : > { %s1098_s11 = sshll.u32 %s209_s10, 4  ;;  %s2131_s20 = scalar_lea.hbm %s2208_s3, %s1278_s13  ;;  %s2141_s11 = int_to_ptr.vmem [resolvable:$true] %s1098_s11 }
  0x27   : > { %570 = vmatpush1.bf16.msra.mxu0 %v1360_v5  ;;  %1301 = vmatpush1.bf16.msra.mxu1 %v1360_v5  ;;  %v1776_v5 = vstv %s1277_s5  ;;  %s2139_s23 = scalar_lea.hbm %s2209_s4, %s1278_s13  ;;  %s1065_s27 = scalar_lea.sflag [#allocation3], %s2121_s8 }
  0x28   : > { %571 = vmatprep.subr.bf16.mxu0 %v1510_v1  ;;  %1288 = vmatprep.subr.bf16.mxu1 %v1510_v1  ;;  %s1418_s28 = scalar_lea.vmem %s2133_s9, 16  ;;  %p1425_p0 = scmp.lt.s32.totalorder %s2133_s9, %s1423_s30 }
  0x29   : > { %p1419_p11 = scmp.ne.s32.totalorder %s2133_s9, %s1418_s28 }
  0x2b   : > { %572 = vmatpush1.bf16.msra.mxu0 %v1361_v7  ;;  %1302 = vmatpush1.bf16.msra.mxu1 %v1361_v7  ;;  %p1420_p12 = pnand %p1419_p11, %p1576_p5 }
  0x2c   : > { %573 = vmatprep.subr.bf16.mxu0 %v1510_v1  ;;  %1289 = vmatprep.subr.bf16.mxu1 %v1510_v1 }
  0x2d   : > { %p1421_p13 = pneg %p1420_p12 }
  0x2f   : > { %574 = vmatpush1.bf16.msra.mxu0 %v1362_v9  ;;  %1303 = vmatpush1.bf16.msra.mxu1 %v1362_v9  ;;  %v791_v9 = vadd.s32 %v1776_v5, %v757_v2 }
  0x30   : > { %575 = vmatprep.subr.bf16.mxu0 %v1510_v1  ;;  %1290 = vmatprep.subr.bf16.mxu1 %v1510_v1 }
  0x31   : > { %vm823_vm3 = vcmp.lt.s32.totalorder %v791_v9, 400 }
  0x33   : > { %576 = vmatpush1.bf16.msra.mxu0 %v1363_v10  ;;  %1304 = vmatpush1.bf16.msra.mxu1 %v1363_v10  ;;  %v759_v10 = vadd.s32 24, %v1756_v63 }
  0x34   : > { %581 = vmatprep.subr.bf16.mxu0 %v1510_v1  ;;  %1291 = vmatprep.subr.bf16.mxu1 %v1510_v1 }
  0x37   : > { %582 = vmatpush2.bf16.msra.mxu0 %v559_v12  ;;  %1305 = vmatpush2.bf16.msra.mxu1 %v559_v12 }
  0x38   : > { %583 = vmatprep.subr.bf16.mxu0 %v1510_v1  ;;  %1292 = vmatprep.subr.bf16.mxu1 %v1510_v1 }
  0x3b   : > { %584 = vmatpush2.bf16.msra.mxu0 %v1365_v13  ;;  %1306 = vmatpush2.bf16.msra.mxu1 %v1365_v13 }
  0x3c   : > { %585 = vmatprep.subr.bf16.mxu0 %v1510_v1  ;;  %1293 = vmatprep.subr.bf16.mxu1 %v1510_v1 }
  0x3f   : > { %586 = vmatpush2.bf16.msra.mxu0 %v1366_v14  ;;  %1307 = vmatpush2.bf16.msra.mxu1 %v1366_v14  ;;  %v790_v14 = vadd.s32 %v1776_v5, %v1756_v63 }
  0x40   : > { %587 = vmatprep.subr.bf16.mxu0 %v1510_v1  ;;  %1294 = vmatprep.subr.bf16.mxu1 %v1510_v1 }
  0x41   : > { %vm822_vm4 = vcmp.lt.s32.totalorder %v790_v14, 400  ;;  %v767_v14 = vadd.s32 88, %v1756_v63 }
  0x43   : > { %588 = vmatpush2.bf16.msra.mxu0 %v1367_v15  ;;  %1308 = vmatpush2.bf16.msra.mxu1 %v1367_v15  ;;  %v792_v15 = vadd.s32 %v1776_v5, %v758_v6 }
  0x44   : > { %589 = vmatprep.subr.bf16.mxu0 %v1510_v1  ;;  %1295 = vmatprep.subr.bf16.mxu1 %v1510_v1 }
  0x45   : > { %vm824_vm5 = vcmp.lt.s32.totalorder %v792_v15, 400 }
  0x47   : > { %590 = vmatpush2.bf16.msra.mxu0 %v1368_v16  ;;  %1309 = vmatpush2.bf16.msra.mxu1 %v1368_v16  ;;  %v761_v16 = vadd.s32 40, %v1756_v63 }
  0x48   : > { %591 = vmatprep.subr.bf16.mxu0 %v1510_v1  ;;  %1296 = vmatprep.subr.bf16.mxu1 %v1510_v1 }
  0x4b   : > { %592 = vmatpush2.bf16.msra.mxu0 %v1369_v17  ;;  %1310 = vmatpush2.bf16.msra.mxu1 %v1369_v17 }
  0x4e   : > { %594 = vmatmul.mubr.bf16.vlgmr.msra.gmra.mxu0 %v1370_v18  ;;  %658 = vmatmul.mubr.bf16.vlgmr.msra.gmra.mxu1 %v1382_v19  ;;  %v762_v18 = vadd.s32 48, %v1756_v63  ;;  %v763_v19 = vadd.s32 56, %v1756_v63 }
  0x4f   : > { %1262 = vmatprep.mubr.msk.bf16.mxu0 %vm508_vm0, %v1373_v20  ;;  %1270 = vmatprep.mubr.msk.bf16.mxu1 %vm508_vm0, %v1388_v21  ;;  %v793_v21 = vadd.s32 %v1776_v5, %v759_v10 }
  0x51   : > { %vm825_vm6 = vcmp.lt.s32.totalorder %v793_v21, 400 }
  0x56   : > { %602 = vmatmul.mubr.bf16.gmra.mxu0 %v1375_v22  ;;  %666 = vmatmul.mubr.bf16.gmra.mxu1 %v1390_v23  ;;  %v794_v22 = vadd.s32 %v1776_v5, %v760_v11 }
  0x57   : > { %1263 = vmatprep.mubr.msk.bf16.mxu0 %vm508_vm0, %v1376_v24  ;;  %1271 = vmatprep.mubr.msk.bf16.mxu1 %vm508_vm0, %v1394_v25  ;;  %v764_v24 = vadd.s32 64, %v1756_v63  ;;  %v765_v25 = vadd.s32 72, %v1756_v63 }
  0x58   : > { %vm826_vm7 = vcmp.lt.s32.totalorder %v794_v22, 400 }
  0x5e   : > { %610 = vmatmul.mubr.bf16.gmra.mxu0 %v1378_v26  ;;  %674 = vmatmul.mubr.bf16.gmra.mxu1 %v1396_v27  ;;  %v795_v27 = vadd.s32 %v1776_v5, %v761_v16 }
  0x5f   : > { %1264 = vmatprep.mubr.msk.bf16.mxu0 %vm508_vm0, %v1379_v28  ;;  %1272 = vmatprep.mubr.msk.bf16.mxu1 %vm508_vm0, %v1400_v29  ;;  %v796_v28 = vadd.s32 %v1776_v5, %v762_v18 }
  0x60   : > { %vm827_vm8 = vcmp.lt.s32.totalorder %v795_v27, 400 }
  0x61   : > { %vm828_vm9 = vcmp.lt.s32.totalorder %v796_v28, 400 }
  0x66   : > { %618 = vmatmul.mubr.bf16.gmra.mxu0 %v1381_v30  ;;  %682 = vmatmul.mubr.bf16.gmra.mxu1 %v1402_v31  ;;  %v1815_v30 = vadd.s32 %v1776_v5, %v763_v19 }
  0x67   : > { %1265 = vmatprep.mubr.msk.bf16.mxu0 %vm508_vm0, %v1385_v32  ;;  %1273 = vmatprep.mubr.msk.bf16.mxu1 %vm508_vm0, %v1406_v33  ;;  %v772_v33 = vadd.s32 128, %v1756_v63 }
  0x68   : > { %vm829_vm10 = vcmp.lt.s32.totalorder %v1815_v30, 400 }
  0x6e   : > { %626 = vmatmul.mubr.bf16.gmra.mxu0 %v1387_v34  ;;  %690 = vmatmul.mubr.bf16.gmra.mxu1 %v1408_v35  ;;  %v773_v34 = vadd.s32 136, %v1756_v63 }
  0x6f   : > { %1266 = vmatprep.mubr.msk.bf16.mxu0 %vm508_vm0, %v1391_v36  ;;  %1274 = vmatprep.mubr.msk.bf16.mxu1 %vm508_vm0, %v1409_v37  ;;  %v1824_v36 = vadd.s32 %v1776_v5, %v764_v24  ;;  %v1827_v37 = vadd.s32 %v1776_v5, %v765_v25 }
  0x71   : > { %vm830_vm11 = vcmp.lt.s32.totalorder %v1824_v36, 400  ;;  %vm831_vm12 = vcmp.lt.s32.totalorder %v1827_v37, 400  ;;  %v770_v37 = vadd.s32 112, %v1756_v63 }
  0x76   : > { %634 = vmatmul.mubr.bf16.gmra.mxu0 %v1393_v38  ;;  %698 = vmatmul.mubr.bf16.gmra.mxu1 %v1411_v39 }
  0x77   : > { %1267 = vmatprep.mubr.msk.bf16.mxu0 %vm508_vm0, %v1397_v40  ;;  %1275 = vmatprep.mubr.msk.bf16.mxu1 %vm508_vm0, %v1412_v41  ;;  %v774_v41 = vadd.s32 144, %v1756_v63 }
  0x7e   : > { %642 = vmatmul.mubr.bf16.gmra.mxu0 %v1399_v42  ;;  %706 = vmatmul.mubr.bf16.gmra.mxu1 %v1414_v43  ;;  %v766_v42 = vadd.s32 80, %v1756_v63 }
  0x7f   : > { %1268 = vmatprep.mubr.msk.bf16.mxu0 %vm508_vm0, %v1403_v44  ;;  %1276 = vmatprep.mubr.msk.bf16.mxu1 %vm508_vm0, %v1415_v45 }
  0x86   : > { %650 = vmatmul.mubr.bf16.gmra.mxu0 %v1405_v46  ;;  %714 = vmatmul.mubr.bf16.gmra.mxu1 %v1417_v47  ;;  %v1848_v47 = vadd.s32 %v1776_v5, %v772_v33 }
  0x88   : > { %vm838_vm0 = vcmp.lt.s32.totalorder %v1848_v47, 400 }
 0x10e   : > { %v1722_v48 = vpop.f32.mrf.mxu0  ;;  %v1724_v49 = vpop.f32.mrf.mxu1 }
 0x10f   : > { %723 = vst.msk [vmem:[%s1720_s6] sm:$0xff] %vm722_vm2, %v1722_v48  ;;  %739 = vst.msk [vmem:[%s1720_s6 + $0x80] sm:$0xff] %vm722_vm2, %v1724_v49  ;;  %v854_v39 = vsel %vm822_vm4, %v1722_v48, 0.0 }
 0x110   : > { %v597_v50 = vpop.f32.mrf.mxu0  ;;  %v661_v51 = vpop.f32.mrf.mxu1 }
 0x111   : > { %v1851_v50 = vadd.s32 %v1776_v5, %v773_v34  ;;  %v775_v51 = vadd.s32 152, %v1756_v63  ;;  %v801_v34 = vadd.s32 %v1776_v5, %v767_v14 }
 0x112   : > { %v1732_v52 = vpop.f32.mrf.mxu0  ;;  %v1734_v53 = vpop.f32.mrf.mxu1 }
 0x113   : > { %724 = vst.msk [vmem:[%s1720_s6 + $0x8] sm:$0xff] %vm722_vm2, %v1732_v52  ;;  %740 = vst.msk [vmem:[%s1720_s6 + $0x88] sm:$0xff] %vm722_vm2, %v1734_v53  ;;  %v855_v32 = vsel %vm823_vm3, %v1732_v52, 0.0  ;;  %v1884_v11 = vadd.s32 %v1776_v5, %v775_v51  ;;  %vm833_vm14 = vcmp.lt.s32.totalorder %v801_v34, 400  ;;  %vm839_vm3 = vcmp.lt.s32.totalorder %v1851_v50, 400 }
 0x114   : > { %v600_v54 = vpop.f32.mrf.mxu0  ;;  %v664_v55 = vpop.f32.mrf.mxu1  ;;  %v958_v43 = vmul.f32 %v855_v32, %v1732_v52  ;;  %v957_v52 = vmul.f32 %v854_v39, %v1722_v48  ;;  %v1872_v48 = vadd.s32 %v1776_v5, %v766_v42  ;;  %v769_v42 = vadd.s32 104, %v1756_v63 }
 0x115   : > { %v887_v54 = vsel %vm722_vm2, %v855_v32, 0.0  ;;  %v871_v47 = vsel %vm839_vm3, %v1734_v53, 0.0 }
 0x116   : > { %v1742_v56 = vpop.f32.mrf.mxu0  ;;  %v1744_v57 = vpop.f32.mrf.mxu1  ;;  %v989_v15 = vsel %vm722_vm2, %v957_v52, 0.0  ;;  %vm832_vm13 = vcmp.lt.s32.totalorder %v1872_v48, 400 }
 0x117   : > { %725 = vst.msk [vmem:[%s1720_s6 + $0x10] sm:$0xff] %vm722_vm2, %v1742_v56  ;;  %741 = vst.msk [vmem:[%s1720_s6 + $0x90] sm:$0xff] %vm722_vm2, %v1744_v57  ;;  %v856_v40 = vsel %vm824_vm5, %v1742_v56, 0.0 }
 0x118   : > { %v605_v59 = vpop.f32.mrf.mxu0  ;;  %v669_v60 = vpop.f32.mrf.mxu1  ;;  %v959_v55 = vmul.f32 %v856_v40, %v1742_v56  ;;  %v886_v56 = vsel %vm722_vm2, %v854_v39, 0.0  ;;  %v889_v2 = vsel %vm722_vm2, %v856_v40, 0.0 }
 0x119   : > { %v888_v9 = vadd.f32 %v887_v54, %v886_v56 }
 0x11a   : > { %v1752_v61 = vpop.f32.mrf.mxu0  ;;  %v1754_v62 = vpop.f32.mrf.mxu1  ;;  %v992_v16 = vsel %vm722_vm2, %v959_v55, 0.0 }
 0x11b   : > { %726 = vst.msk [vmem:[%s1720_s6 + $0x18] sm:$0xff] %vm722_vm2, %v1752_v61  ;;  %742 = vst.msk [vmem:[%s1720_s6 + $0x98] sm:$0xff] %vm722_vm2, %v1754_v62  ;;  %v857_v46 = vsel %vm825_vm6, %v1752_v61, 0.0  ;;  %v890_v21 = vadd.f32 %v889_v2, %v888_v9  ;;  %vm841_vm6 = vcmp.lt.s32.totalorder %v1884_v11, 400 }
 0x11c   : > { %v608_v0 = vpop.f32.mrf.mxu0  ;;  %v672_v1 = vpop.f32.mrf.mxu1  ;;  %v960_v6 = vmul.f32 %v857_v46, %v1752_v61 }
 0x11d   : > { %v1868_v0 = vadd.s32 %v1776_v5, %v774_v41  ;;  %v990_v1 = vsel %vm722_vm2, %v958_v43, 0.0 }
 0x11e   : > { %v1766_v3 = vpop.f32.mrf.mxu0  ;;  %v1768_v4 = vpop.f32.mrf.mxu1  ;;  %v994_v24 = vsel %vm722_vm2, %v960_v6, 0.0 }
 0x11f   : > { %727 = vst.msk [vmem:[%s1720_s6 + $0x20] sm:$0xff] %vm722_vm2, %v1766_v3  ;;  %743 = vst.msk [vmem:[%s1720_s6 + $0xa0] sm:$0xff] %vm722_vm2, %v1768_v4  ;;  %v858_v60 = vsel %vm826_vm7, %v1766_v3, 0.0  ;;  %vm840_vm4 = vcmp.lt.s32.totalorder %v1868_v0, 400 }
 0x120   : > { %v613_v7 = vpop.f32.mrf.mxu0  ;;  %v677_v8 = vpop.f32.mrf.mxu1  ;;  %v961_v61 = vmul.f32 %v858_v60, %v1766_v3  ;;  %v893_v25 = vsel %vm722_vm2, %v858_v60, 0.0  ;;  %v872_v50 = vsel %vm840_vm4, %v1744_v57, 0.0 }
 0x122   : > { %v1782_v12 = vpop.f32.mrf.mxu0  ;;  %v1784_v13 = vpop.f32.mrf.mxu1  ;;  %v996_v39 = vsel %vm722_vm2, %v961_v61, 0.0 }
 0x123   : > { %728 = vst.msk [vmem:[%s1720_s6 + $0x28] sm:$0xff] %vm722_vm2, %v1782_v12  ;;  %744 = vst.msk [vmem:[%s1720_s6 + $0xa8] sm:$0xff] %vm722_vm2, %v1784_v13  ;;  %v859_v10 = vsel %vm827_vm8, %v1782_v12, 0.0 }
 0x124   : > { %v616_v17 = vpop.f32.mrf.mxu0  ;;  %v680_v20 = vpop.f32.mrf.mxu1  ;;  %v962_v3 = vmul.f32 %v859_v10, %v1782_v12  ;;  %v895_v40 = vsel %vm722_vm2, %v859_v10, 0.0 }
 0x125   : > { %v891_v17 = vsel %vm722_vm2, %v857_v46, 0.0  ;;  %v991_v20 = vadd.f32 %v990_v1, %v989_v15  ;;  %v776_v46 = vadd.s32 160, %v1756_v63 }
 0x126   : > { %v1800_v23 = vpop.f32.mrf.mxu0  ;;  %v1804_v26 = vpop.f32.mrf.mxu1  ;;  %v892_v32 = vadd.f32 %v891_v17, %v890_v21 }
 0x127   : > { %729 = vst.msk [vmem:[%s1720_s6 + $0x30] sm:$0xff] %vm722_vm2, %v1800_v23  ;;  %745 = vst.msk [vmem:[%s1720_s6 + $0xb0] sm:$0xff] %vm722_vm2, %v1804_v26  ;;  %v860_v22 = vsel %vm828_vm9, %v1800_v23, 0.0  ;;  %v993_v28 = vadd.f32 %v992_v16, %v991_v20 }
 0x128   : > { %v621_v29 = vpop.f32.mrf.mxu0  ;;  %v685_v31 = vpop.f32.mrf.mxu1  ;;  %v963_v12 = vmul.f32 %v860_v22, %v1800_v23  ;;  %v998_v23 = vsel %vm722_vm2, %v962_v3, 0.0  ;;  %v897_v51 = vsel %vm722_vm2, %v860_v22, 0.0 }
 0x129   : > { %v768_v29 = vadd.s32 96, %v1756_v63 }
 0x12a   : > { %v1821_v35 = vpop.f32.mrf.mxu0  ;;  %v1829_v38 = vpop.f32.mrf.mxu1  ;;  %v1000_v2 = vsel %vm722_vm2, %v963_v12, 0.0 }
 0x12b   : > { %730 = vst.msk [vmem:[%s1720_s6 + $0x38] sm:$0xff] %vm722_vm2, %v1821_v35  ;;  %746 = vst.msk [vmem:[%s1720_s6 + $0xb8] sm:$0xff] %vm722_vm2, %v1829_v38  ;;  %v861_v33 = vsel %vm829_vm10, %v1821_v35, 0.0  ;;  %v802_v55 = vadd.s32 %v1776_v5, %v768_v29 }
 0x12c   : > { %v624_v44 = vpop.f32.mrf.mxu0  ;;  %v688_v45 = vpop.f32.mrf.mxu1  ;;  %v964_v52 = vmul.f32 %v861_v33, %v1821_v35  ;;  %v899_v6 = vsel %vm722_vm2, %v861_v33, 0.0  ;;  %v803_v35 = vadd.s32 %v1776_v5, %v769_v42  ;;  %v804_v33 = vadd.s32 %v1776_v5, %v770_v37 }
 0x12d   : > { %v995_v44 = vadd.f32 %v994_v24, %v993_v28  ;;  %v894_v45 = vadd.f32 %v893_v25, %v892_v32  ;;  %vm834_vm15 = vcmp.lt.s32.totalorder %v802_v55, 400  ;;  %v777_v24 = vadd.s32 168, %v1756_v63 }
 0x12e   : > { %v1857_v58 = vpop.f32.mrf.mxu0  ;;  %v1860_v59 = vpop.f32.mrf.mxu1  ;;  %v1002_v16 = vsel %vm722_vm2, %v964_v52, 0.0  ;;  %vm835_vm1 = vcmp.lt.s32.totalorder %v803_v35, 400  ;;  %vm836_vm5 = vcmp.lt.s32.totalorder %v804_v33, 400 }
 0x12f   : > { %731 = vst.msk [vmem:[%s1720_s6 + $0x40] sm:$0xff] %vm722_vm2, %v1857_v58  ;;  %747 = vst.msk [vmem:[%s1720_s6 + $0xc0] sm:$0xff] %vm722_vm2, %v1860_v59  ;;  %v862_v30 = vsel %vm830_vm11, %v1857_v58, 0.0  ;;  %v997_v36 = vadd.f32 %v996_v39, %v995_v44  ;;  %v896_v56 = vadd.f32 %v895_v40, %v894_v45  ;;  %v1985_v37 = vadd.s32 %v1776_v5, %v777_v24 }
 0x130   : > { %v629_v7 = vpop.f32.mrf.mxu0  ;;  %v693_v8 = vpop.f32.mrf.mxu1 }
 0x131   : > { %v965_v7 = vmul.f32 %v862_v30, %v1857_v58  ;;  %v999_v10 = vadd.f32 %v998_v23, %v997_v36  ;;  %v898_v14 = vadd.f32 %v897_v51, %v896_v56  ;;  %v901_v58 = vsel %vm722_vm2, %v862_v30, 0.0 }
 0x132   : > { %v630_v18 = vpop.f32.mrf.mxu0  ;;  %v1891_v19 = vpop.f32.mrf.mxu1  ;;  %v1965_v30 = vadd.s32 %v1776_v5, %v776_v46  ;;  %v778_v23 = vadd.s32 176, %v1756_v63  ;;  %vm843_vm9 = vcmp.lt.s32.totalorder %v1985_v37, 400  ;;  %v784_v37 = vadd.s32 224, %v1756_v63 }
 0x133   : > { %732 = vst.msk [vmem:[%s1720_s6 + $0x48] sm:$0xff] %vm722_vm2, %v630_v18  ;;  %748 = vst.msk [vmem:[%s1720_s6 + $0xc8] sm:$0xff] %vm722_vm2, %v1891_v19  ;;  %v863_v1 = vsel %vm831_vm12, %v630_v18, 0.0  ;;  %v1001_v21 = vadd.f32 %v1000_v2, %v999_v10  ;;  %v900_v48 = vadd.f32 %v899_v6, %v898_v14  ;;  %v1004_v25 = vsel %vm722_vm2, %v965_v7, 0.0 }
 0x134   : > { %v632_v27 = vpop.f32.mrf.mxu0  ;;  %v696_v31 = vpop.f32.mrf.mxu1  ;;  %v966_v17 = vmul.f32 %v863_v1, %v630_v18  ;;  %v903_v3 = vsel %vm722_vm2, %v863_v1, 0.0  ;;  %vm842_vm7 = vcmp.lt.s32.totalorder %v1965_v30, 400 }
 0x135   : > { %v1003_v31 = vadd.f32 %v1002_v16, %v1001_v21  ;;  %v902_v28 = vadd.f32 %v901_v58, %v900_v48  ;;  %v1990_v58 = vadd.s32 %v1776_v5, %v778_v23 }
 0x136   : > { %v635_v41 = vpop.f32.mrf.mxu0  ;;  %v1913_v43 = vpop.f32.mrf.mxu1  ;;  %v1006_v34 = vsel %vm722_vm2, %v966_v17, 0.0 }
 0x137   : > { %733 = vst.msk [vmem:[%s1720_s6 + $0x50] sm:$0xff] %vm722_vm2, %v635_v41  ;;  %749 = vst.msk [vmem:[%s1720_s6 + $0xd0] sm:$0xff] %vm722_vm2, %v1913_v43  ;;  %v864_v15 = vsel %vm832_vm13, %v635_v41, 0.0  ;;  %v1005_v44 = vadd.f32 %v1004_v25, %v1003_v31  ;;  %v904_v45 = vadd.f32 %v903_v3, %v902_v28  ;;  %v870_v28 = vsel %vm838_vm0, %v1724_v49, 0.0 }
 0x138   : > { %v637_v54 = vpop.f32.mrf.mxu0  ;;  %v701_v60 = vpop.f32.mrf.mxu1  ;;  %v967_v27 = vmul.f32 %v864_v15, %v635_v41  ;;  %v905_v39 = vsel %vm722_vm2, %v864_v15, 0.0  ;;  %v771_v41 = vadd.s32 120, %v1756_v63  ;;  %vm844_vm10 = vcmp.lt.s32.totalorder %v1990_v58, 400 }
 0x139   : > { %v779_v60 = vadd.s32 184, %v1756_v63  ;;  %v1007_v56 = vadd.f32 %v1006_v34, %v1005_v44  ;;  %v906_v1 = vadd.f32 %v905_v39, %v904_v45  ;;  %v780_v34 = vadd.s32 192, %v1756_v63 }
 0x13a   : > { %v638_v8 = vpop.f32.mrf.mxu0  ;;  %v1934_v9 = vpop.f32.mrf.mxu1  ;;  %v1008_v51 = vsel %vm722_vm2, %v967_v27, 0.0  ;;  %v805_v10 = vadd.s32 %v1776_v5, %v771_v41  ;;  %v973_v23 = vmul.f32 %v870_v28, %v1724_v49  ;;  %v785_v58 = vadd.s32 232, %v1756_v63 }
 0x13b   : > { %734 = vst.msk [vmem:[%s1720_s6 + $0x58] sm:$0xff] %vm722_vm2, %v638_v8  ;;  %750 = vst.msk [vmem:[%s1720_s6 + $0xd8] sm:$0xff] %vm722_vm2, %v1934_v9  ;;  %v865_v22 = vsel %vm833_vm14, %v638_v8, 0.0  ;;  %v1009_v15 = vadd.f32 %v1008_v51, %v1007_v56  ;;  %v814_v56 = vadd.s32 %v1776_v5, %v780_v34 }
 0x13c   : > { %v640_v61 = vpop.f32.mrf.mxu0  ;;  %v704_v20 = vpop.f32.mrf.mxu1  ;;  %v968_v40 = vmul.f32 %v865_v22, %v638_v8  ;;  %v907_v52 = vsel %vm722_vm2, %v865_v22, 0.0  ;;  %v1996_v22 = vadd.s32 %v1776_v5, %v779_v60  ;;  %vm837_vm8 = vcmp.lt.s32.totalorder %v805_v10, 400 }
 0x13d   : > { %v908_v35 = vadd.f32 %v907_v52, %v906_v1  ;;  %vm846_vm12 = vcmp.lt.s32.totalorder %v814_v56, 400  ;;  %v819_v56 = vadd.s32 %v1776_v5, %v785_v58 }
 0x13e   : > { %v643_v29 = vpop.f32.mrf.mxu0  ;;  %v1951_v18 = vpop.f32.mrf.mxu1  ;;  %v1010_v2 = vsel %vm722_vm2, %v968_v40, 0.0  ;;  %vm845_vm11 = vcmp.lt.s32.totalorder %v1996_v22, 400 }
 0x13f   : > { %735 = vst.msk [vmem:[%s1720_s6 + $0x60] sm:$0xff] %vm722_vm2, %v643_v29  ;;  %v866_v32 = vsel %vm834_vm15, %v643_v29, 0.0  ;;  %751 = vst.msk [vmem:[%s1720_s6 + $0xe0] sm:$0xff] %vm722_vm2, %v1951_v18  ;;  %v1011_v21 = vadd.f32 %v1010_v2, %v1009_v15  ;;  %v974_v2 = vmul.f32 %v871_v47, %v1734_v53  ;;  %v919_v15 = vsel %vm722_vm2, %v871_v47, 0.0 }
 0x140   : > { %v645_v12 = vpop.f32.mrf.mxu0  ;;  %v709_v42 = vpop.f32.mrf.mxu1  ;;  %v969_v54 = vmul.f32 %v866_v32, %v643_v29  ;;  %v909_v6 = vsel %vm722_vm2, %v866_v32, 0.0  ;;  %v783_v53 = vadd.s32 216, %v1756_v63 }
 0x141   : > { %v910_v48 = vadd.f32 %v909_v6, %v908_v35  ;;  %v781_v12 = vadd.s32 200, %v1756_v63  ;;  %v782_v6 = vadd.s32 208, %v1756_v63  ;;  %v975_v35 = vmul.f32 %v872_v50, %v1744_v57 }
 0x142   : > { %v646_v55 = vpop.f32.mrf.mxu0  ;;  %v1972_v36 = vpop.f32.mrf.mxu1  ;;  %v1012_v16 = vsel %vm722_vm2, %v969_v54, 0.0  ;;  %v875_v57 = vsel %vm843_vm9, %v1784_v13, 0.0 }
 0x143   : > { %736 = vst.msk [vmem:[%s1720_s6 + $0x68] sm:$0xff] %vm722_vm2, %v646_v55  ;;  %v867_v46 = vsel %vm835_vm1, %v646_v55, 0.0  ;;  %752 = vst.msk [vmem:[%s1720_s6 + $0xe8] sm:$0xff] %vm722_vm2, %v1972_v36  ;;  %v1013_v32 = vadd.f32 %v1012_v16, %v1011_v21  ;;  %v815_v0 = vadd.s32 %v1776_v5, %v781_v12  ;;  %v874_v16 = vsel %vm842_vm7, %v1768_v4, 0.0 }
 0x144   : > { %v970_v7 = vmul.f32 %v867_v46, %v646_v55  ;;  %v648_v8 = vpop.f32.mrf.mxu0  ;;  %v712_v14 = vpop.f32.mrf.mxu1  ;;  %v911_v17 = vsel %vm722_vm2, %v867_v46, 0.0  ;;  %v917_v46 = vsel %vm722_vm2, %v870_v28, 0.0  ;;  %v921_v21 = vsel %vm722_vm2, %v872_v50, 0.0 }
 0x145   : > { %v912_v33 = vadd.f32 %v911_v17, %v910_v48  ;;  %v1020_v14 = vsel %vm722_vm2, %v973_v23, 0.0  ;;  %vm847_vm13 = vcmp.lt.s32.totalorder %v815_v0, 400  ;;  %v1024_v30 = vsel %vm722_vm2, %v975_v35, 0.0 }
 0x146   : > { %v651_v61 = vpop.f32.mrf.mxu0  ;;  %v1993_v20 = vpop.f32.mrf.mxu1  ;;  %v1014_v25 = vsel %vm722_vm2, %v970_v7, 0.0  ;;  %v873_v7 = vsel %vm841_vm6, %v1754_v62, 0.0  ;;  %v925_v34 = vsel %vm722_vm2, %v874_v16, 0.0  ;;  %v879_v50 = vsel %vm847_vm13, %v1891_v19, 0.0 }
 0x147   : > { %737 = vst.msk [vmem:[%s1720_s6 + $0x70] sm:$0xff] %vm722_vm2, %v651_v61  ;;  %v868_v24 = vsel %vm836_vm5, %v651_v61, 0.0  ;;  %753 = vst.msk [vmem:[%s1720_s6 + $0xf0] sm:$0xff] %vm722_vm2, %v1993_v20  ;;  %v1015_v42 = vadd.f32 %v1014_v25, %v1013_v32  ;;  %v976_v48 = vmul.f32 %v873_v7, %v1754_v62  ;;  %v876_v62 = vsel %vm844_vm10, %v1804_v26, 0.0 }
 0x148   : > { %v913_v3 = vsel %vm722_vm2, %v868_v24, 0.0  ;;  %v971_v27 = vmul.f32 %v868_v24, %v651_v61  ;;  %v653_v29 = vpop.f32.mrf.mxu0  ;;  %v717_v31 = vpop.f32.mrf.mxu1  ;;  %v1022_v61 = vsel %vm722_vm2, %v974_v2, 0.0  ;;  %v816_v24 = vadd.s32 %v1776_v5, %v782_v6 }
 0x149   : > { %v914_v44 = vadd.f32 %v913_v3, %v912_v33  ;;  %v977_v29 = vmul.f32 %v874_v16, %v1768_v4  ;;  %v817_v31 = vadd.s32 %v1776_v5, %v783_v53  ;;  %v1026_v33 = vsel %vm722_vm2, %v976_v48, 0.0 }
 0x14a   : > { %v1016_v39 = vsel %vm722_vm2, %v971_v27, 0.0  ;;  %v654_v40 = vpop.f32.mrf.mxu0  ;;  %v2014_v41 = vpop.f32.mrf.mxu1  ;;  %v923_v27 = vsel %vm722_vm2, %v873_v7, 0.0  ;;  %vm848_vm14 = vcmp.lt.s32.totalorder %v816_v24, 400  ;;  %v877_v4 = vsel %vm845_vm11, %v1829_v38, 0.0 }
 0x14b   : > { %738 = vst.msk [vmem:[%s1720_s6 + $0x78] sm:$0xff] %vm722_vm2, %v654_v40  ;;  %v869_v45 = vsel %vm837_vm8, %v654_v40, 0.0  ;;  %754 = vst.msk [vmem:[%s1720_s6 + $0xf8] sm:$0xff] %vm722_vm2, %v2014_v41  ;;  %v1017_v60 = vadd.f32 %v1016_v39, %v1015_v42  ;;  %v978_v39 = vmul.f32 %v875_v57, %v1784_v13  ;;  %v1028_v47 = vsel %vm722_vm2, %v977_v29, 0.0  ;;  %s1424_s6 = scalar_lea.vmem %s1423_s30, 32 }
 0x14c   : > { %v915_v51 = vsel %vm722_vm2, %v869_v45, 0.0  ;;  %v972_v52 = vmul.f32 %v869_v45, %v654_v40  ;;  %v656_v54 = vpop.f32.mrf.mxu0  ;;  %v720_v55 = vpop.f32.mrf.mxu1  ;;  %v927_v42 = vsel %vm722_vm2, %v875_v57, 0.0  ;;  %vm849_vm15 = vcmp.lt.s32.totalorder %v817_v31, 400  ;;  %p1426_p1 = scmp.lt.s32.totalorder %s1424_s6, %s1418_s28 }
 0x14d   : > { %v916_v1 = vadd.f32 %v915_v51, %v914_v44  ;;  %v979_v44 = vmul.f32 %v876_v62, %v1804_v26  ;;  %v878_v45 = vsel %vm846_vm12, %v1860_v59, 0.0  ;;  %v818_v51 = vadd.s32 %v1776_v5, %v784_v37 }
 0x14e   : > { %v1018_v49 = vsel %vm722_vm2, %v972_v52, 0.0  ;;  %v1030_v22 = vsel %vm722_vm2, %v978_v39, 0.0  ;;  %v929_v52 = vsel %vm722_vm2, %v876_v62, 0.0  ;;  %v980_v54 = vmul.f32 %v877_v4, %v1829_v38  ;;  %p1427_p2 = por %p1426_p1, %p1425_p0 }
 0x14f   : > { %v918_v8 = vadd.f32 %v917_v46, %v916_v1  ;;  %v1019_v10 = vadd.f32 %v1018_v49, %v1017_v60  ;;  %v786_v55 = vadd.s32 240, %v1756_v63  ;;  %v1032_v1 = vsel %vm722_vm2, %v979_v44, 0.0 }
 0x150   : > { %v931_v46 = vsel %vm722_vm2, %v877_v4, 0.0  ;;  %v981_v2 = vmul.f32 %v878_v45, %v1860_v59  ;;  %v787_v49 = vadd.s32 248, %v1756_v63  ;;  %v880_v38 = vsel %vm848_vm14, %v1913_v43, 0.0  ;;  %p1428_p3 = pnand %p1427_p2, %p1421_p13 }
 0x151   : > { %v920_v17 = vadd.f32 %v919_v15, %v918_v8  ;;  %v1021_v11 = vadd.f32 %v1020_v14, %v1019_v10  ;;  %vm850_vm0 = vcmp.lt.s32.totalorder %v818_v51, 400  ;;  %v1034_v8 = vsel %vm722_vm2, %v980_v54, 0.0 }
 0x152   : > { %v933_v10 = vsel %vm722_vm2, %v878_v45, 0.0  ;;  %v982_v0 = vmul.f32 %v879_v50, %v1891_v19  ;;  %v820_v14 = vadd.s32 %v1776_v5, %v786_v55  ;;  %v881_v59 = vsel %vm849_vm15, %v1934_v9, 0.0 }
 0x153   : > { %v922_v25 = vadd.f32 %v921_v21, %v920_v17  ;;  %v1023_v3 = vadd.f32 %v1022_v61, %v1021_v11  ;;  %vm851_vm1 = vcmp.lt.s32.totalorder %v819_v56, 400  ;;  %v1036_v63 = vsel %vm722_vm2, %v981_v2, 0.0 }
 0x154   : > { %v935_v53 = vsel %vm722_vm2, %v879_v50, 0.0  ;;  %v983_v16 = vmul.f32 %v880_v38, %v1913_v43  ;;  %v821_v17 = vadd.s32 %v1776_v5, %v787_v49  ;;  %v882_v19 = vsel %vm850_vm0, %v1951_v18, 0.0 }
 0x155   : > { %v924_v28 = vadd.f32 %v923_v27, %v922_v25  ;;  %v1025_v32 = vadd.f32 %v1024_v30, %v1023_v3  ;;  %v1038_v21 = vsel %vm722_vm2, %v982_v0, 0.0  ;;  %v937_v48 = vsel %vm722_vm2, %v880_v38, 0.0 }
 0x156   : > { %v984_v24 = vmul.f32 %v881_v59, %v1934_v9  ;;  %vm852_vm3 = vcmp.lt.s32.totalorder %v820_v14, 400  ;;  %v883_v3 = vsel %vm851_vm1, %v1972_v36, 0.0  ;;  %v1040_v30 = vsel %vm722_vm2, %v983_v16, 0.0 }
 0x157   : > { %v1027_v40 = vadd.f32 %v1026_v33, %v1025_v32  ;;  %v926_v12 = vadd.f32 %v925_v34, %v924_v28  ;;  %v939_v43 = vsel %vm722_vm2, %v881_v59, 0.0  ;;  %v985_v5 = vmul.f32 %v882_v19, %v1951_v18 }
 0x158   : > { %vm853_vm4 = vcmp.lt.s32.totalorder %v821_v17, 400  ;;  %v884_v31 = vsel %vm852_vm3, %v1993_v20, 0.0  ;;  %v1042_v62 = vsel %vm722_vm2, %v984_v24, 0.0  ;;  %v941_v9 = vsel %vm722_vm2, %v882_v19, 0.0 }
 0x159   : > { %v928_v13 = vadd.f32 %v927_v42, %v926_v12  ;;  %v1029_v23 = vadd.f32 %v1028_v47, %v1027_v40  ;;  %v986_v28 = vmul.f32 %v883_v3, %v1972_v36  ;;  %v885_v33 = vsel %vm853_vm4, %v2014_v41, 0.0 }
 0x15a   : > { %v1044_v34 = vsel %vm722_vm2, %v985_v5, 0.0  ;;  %v943_v39 = vsel %vm722_vm2, %v883_v3, 0.0  ;;  %v987_v18 = vmul.f32 %v884_v31, %v1993_v20  ;;  %v945_v58 = vsel %vm722_vm2, %v884_v31, 0.0 }
 0x15b   : > { %v930_v26 = vadd.f32 %v929_v52, %v928_v13  ;;  %v1031_v60 = vadd.f32 %v1030_v22, %v1029_v23  ;;  %v1046_v12 = vsel %vm722_vm2, %v986_v28, 0.0  ;;  %v988_v47 = vmul.f32 %v885_v33, %v2014_v41 }
 0x15c   : > { %v1048_v44 = vsel %vm722_vm2, %v987_v18, 0.0  ;;  %v947_v45 = vsel %vm722_vm2, %v885_v33, 0.0 }
 0x15d   : > { %v932_v6 = vadd.f32 %v931_v46, %v930_v26  ;;  %v1033_v7 = vadd.f32 %v1032_v1, %v1031_v60  ;;  %v1050_v51 = vsel %vm722_vm2, %v988_v47, 0.0  ;;  %vm955_vm2 = vcmask 57344  }
 0x15f   : > { %v934_v15 = vadd.f32 %v933_v10, %v932_v6  ;;  %v1035_v35 = vadd.f32 %v1034_v8, %v1033_v7 }
 0x161   : > { %v936_v11 = vadd.f32 %v935_v53, %v934_v15  ;;  %v1037_v61 = vadd.f32 %v1036_v63, %v1035_v35 }
 0x163   : > { %v1039_v57 = vadd.f32 %v1038_v21, %v1037_v61  ;;  %v938_v25 = vadd.f32 %v937_v48, %v936_v11 }
 0x165   : > { %v1041_v27 = vadd.f32 %v1040_v30, %v1039_v57  ;;  %v940_v29 = vadd.f32 %v939_v43, %v938_v25 }
 0x167   : > { %v1043_v32 = vadd.f32 %v1042_v62, %v1041_v27  ;;  %v942_v37 = vadd.f32 %v941_v9, %v940_v29 }
 0x169   : > { %v1045_v4 = vadd.f32 %v1044_v34, %v1043_v32  ;;  %v944_v40 = vadd.f32 %v943_v39, %v942_v37 }
 0x16b   : > { %v1047_v36 = vadd.f32 %v1046_v12, %v1045_v4  ;;  %v946_v42 = vadd.f32 %v945_v58, %v944_v40 }
 0x16d   : > { %v1049_v13 = vadd.f32 %v1048_v44, %v1047_v36  ;;  %v948_v23 = vadd.f32 %v947_v45, %v946_v42 }
 0x16f   : > { %v949_v20 = vrot.slane %v948_v23, 4  ;;  %v1051_v22 = vadd.f32 %v1050_v51, %v1049_v13 }
 0x171   : > { %v950_v52 = vadd.f32 %v949_v20, %v948_v23  ;;  %v1052_v41 = vrot.slane %v1051_v22, 4 }
 0x173   : > { %v951_v54 = vrot.slane %v950_v52, 2  ;;  %v1053_v55 = vadd.f32 %v1052_v41, %v1051_v22 }
 0x175   : > { %v952_v50 = vadd.f32 %v951_v54, %v950_v52  ;;  %v1054_v26 = vrot.slane %v1053_v55, 2 }
 0x177   : > { %v953_v60 = vrot.slane %v952_v50, 1  ;;  %v1055_v56 = vadd.f32 %v1054_v26, %v1053_v55 }
 0x179   : > { %v954_v1 = vadd.f32 %v953_v60, %v952_v50  ;;  %v1056_v46 = vrot.slane %v1055_v56, 1 }
 0x17b   : > { %956 = vst.msk [vmem:[%s203_s7] sm:$0x1] %vm955_vm2, %v954_v1  ;;  %v1057_v2 = vadd.f32 %v1056_v46, %v1055_v56 }
 0x17c   : > { %1431 = shalt.err (!%p1428_p3)
}
 0x17d   : > { %s1432_s5 = scalar_lea.hbm %s2131_s20, 16  ;;  %s1436_s12 = scalar_lea.hbm %s2208_s3, 32 }
 0x17e   : > { %p1433_p4 = scmp.ne.s32.totalorder %s2131_s20, %s1432_s5  ;;  %p1437_p9 = scmp.lt.s32.totalorder %s2131_s20, %s2208_s3 }
 0x17f   : > { %p1438_p10 = scmp.lt.s32.totalorder %s1436_s12, %s1432_s5 }
 0x180   : > { %p1434_p7 = pnand %p1433_p4, %p1576_p5 }
 0x181   : > { %p1439_p11 = por %p1438_p10, %p1437_p9 }
 0x182   : > { %p1435_p8 = pneg %p1434_p7 }
 0x184   : > { %p1440_p12 = pnand %p1439_p11, %p1435_p8 }
 0x186   : > { %1443 = shalt.err (!%p1440_p12)
}
 0x187   : > { %1311 = dma.vmem_to_hbm [thread:$0]  (%p1576_p5), %s2133_s9, 16, %s2131_s20, %s1065_s27   ;;  %1058 = vst.msk [vmem:[%s209_s10] sm:$0x1] %vm955_vm2, %v1057_v2 }
 0x188   : > { %s1069_s22 = scalar_lea.sflag [#allocation5], %s2121_s8  ;;  %s1444_s28 = scalar_lea.vmem %s2141_s11, 16 }
 0x189   : > { %p1445_p13 = scmp.ne.s32.totalorder %s2141_s11, %s1444_s28  ;;  %s1512_s29 = smov [#allocation4]  }
 0x18a   : > { %s1448_s30 = sshll.u32 %s1512_s29, 4  ;;  %s1449_s30 = int_to_ptr.vmem [resolvable:$false] %s1448_s30 }
 0x18b   : > { %p1446_p0 = pnand %p1445_p13, %p1576_p5  ;;  %s1450_s6 = scalar_lea.vmem %s1449_s30, 32 }
 0x18c   : > { %p1451_p2 = scmp.lt.s32.totalorder %s2141_s11, %s1449_s30  ;;  %p1452_p3 = scmp.lt.s32.totalorder %s1450_s6, %s1444_s28 }
 0x18d   : > { %p1447_p1 = pneg %p1446_p0 }
 0x18e   : > { %p1453_p4 = por %p1452_p3, %p1451_p2 }
 0x190   : > { %p1454_p7 = pnand %p1453_p4, %p1447_p1 }
 0x192   : > { %1457 = shalt.err (!%p1454_p7)
}
 0x193   : > { %s1458_s9 = scalar_lea.hbm %s2139_s23, 16  ;;  %s1462_s20 = scalar_lea.hbm %s2209_s4, 32 }
 0x194   : > { %p1459_p8 = scmp.ne.s32.totalorder %s2139_s23, %s1458_s9  ;;  %p1463_p11 = scmp.lt.s32.totalorder %s2139_s23, %s2209_s4 }
 0x195   : > { %p1464_p12 = scmp.lt.s32.totalorder %s1462_s20, %s1458_s9 }
 0x196   : > { %p1460_p9 = pnand %p1459_p8, %p1576_p5 }
 0x197   : > { %p1465_p13 = por %p1464_p12, %p1463_p11 }
 0x198   : > { %p1461_p10 = pneg %p1460_p9 }
 0x19a   : > { %p1466_p0 = pnand %p1465_p13, %p1461_p10 }
 0x19c   : > { %1469 = shalt.err (!%p1466_p0)
}
 0x19d   : > { %1312 = dma.vmem_to_hbm [thread:$0]  (%p1576_p5), %s2141_s11, 16, %s2139_s23, %s1069_s22  }
 0x19e PF: > { %p1322_p1 = scmp.ge.s32.totalorder %s1508_s18, 2  ;;  %s1118_s13 = sand.u32 1, %s1496_s15  }
 0x19f   : > { %s1119_s7 = scalar_lea.sflag [#allocation3], %s1118_s13 }
 0x1a0   : > { %p1316_p2 = pnand %p1322_p1, %p1580_p6 }
 0x1a2   : > { %p1317_p3 = pneg %p1316_p2 }
 0x1a4   : > { %1487 = dma.done.wait (%p1317_p3), %s1119_s7, 16  }
 0x1a5   : > { %1489 = vsyncadd (%p1317_p3), %s1119_s7, 4294967280  ;;  %s1127_s12 = scalar_lea.sflag [#allocation5], %s1118_s13 }
 0x1a6   : > { %1491 = dma.done.wait (%p1317_p3), %s1127_s12, 16  }
 0x1a7   : > { %1493 = vsyncadd (%p1317_p3), %s1127_s12, 4294967280  ;;  %p18_p5 = scmp.ge.s32.totalorder %s1563_s21, 4   ;;  %s2212_s15 = smov %s1500_s16 }
 0x1a8   : > { %s2213_s16 = smov %s1504_s17  ;;  %s2214_s17 = smov %s1574_s24 }
 0x1a9   : > { %s2215_s18 = smov %s1563_s21  ;;  %20 = sbr.rel (!%p18_p5) target bundleno = 5 (0x5), region = 92 }
 0x1ae   :  { %1131 = vsyncpa [#allocation3], 1 }
 0x1af   :  { %1133 = vsyncpa [#allocation3 + $0x1], 1 }
 0x1b0   :  { %1134 = vsyncpa [#allocation5], 1 }
 0x1b1   :  { %1136 = vsyncpa [#allocation5 + $0x1], 1 }

</bundles_post_ra>
